<compile_context>
chip_gen: v7x
topology: tpu7x:2x2x1
jax: 0.10.0
libtpu: 0.0.40
codegen_flags: <defaults>
</compile_context>

<pallas_src>
import math
import functools

import jax
import jax.numpy as jnp
from jax import lax
from jax.experimental import pallas as pl
from jax.experimental.pallas import tpu as pltpu

F32 = jnp.float32
BF16 = jnp.bfloat16


def _layernorm(x, gamma, beta, eps=1e-5):
    mean = jnp.mean(x, axis=-1, keepdims=True)
    var = jnp.mean((x - mean) ** 2, axis=-1, keepdims=True)
    return (x - mean) * jax.lax.rsqrt(var + eps) * gamma + beta


# --------------------------------------------------------------------------
# K/V projection kernel: runs once over the sequence (not once per q-tile).
# Emits K and V head-split (B, H, S, d_k) in bf16 so the attention kernel
# needs no in-kernel transpose and DMAs half the bytes.
# --------------------------------------------------------------------------
def kv_proj_kernel(x_ref, wkv_ref, bkv_ref, k_ref, v_ref, *, num_heads):
    x = x_ref[0].astype(BF16)                                  # (TS, D)
    D = x.shape[-1]
    d_k = D // num_heads
    kv = jnp.dot(x, wkv_ref[...], preferred_element_type=F32) + bkv_ref[...]
    k_full = kv[:, :D]
    v_full = kv[:, D:]
    for h in range(num_heads):                                 # lane-slice stores
        lo, hi = h * d_k, (h + 1) * d_k
        k_ref[0, h] = k_full[:, lo:hi].astype(k_ref.dtype)
        v_ref[0, h] = v_full[:, lo:hi].astype(v_ref.dtype)


# --------------------------------------------------------------------------
# Fused encoder-layer kernel: Q-proj + flash attention + Wo + LN1 + FFN + LN2.
# Grid = (batch, q-tile, kv-tile); kv axis is the reduction ('arbitrary').
# --------------------------------------------------------------------------
def encoder_layer_kernel(
    xq_ref,                              # (1, TQ, D) f32  query rows / residual
    k_ref, v_ref,                        # (1, H, TKV, d_k) bf16 precomputed K/V
    wq_ref, bq_ref, wo_ref, bo_ref,      # attention params (VMEM resident)
    g1_ref, be1_ref,                     # layernorm 1
    w1_ref, b1_ref, w2_ref, b2_ref,      # feed-forward
    g2_ref, be2_ref,                     # layernorm 2
    o_ref,
    q_sc, m_sc, l_sc, acc_sc, cat_sc,    # VMEM scratch
    *, num_heads,
):
    skv = pl.program_id(2)
    n_kv = pl.num_programs(2)

    D = xq_ref.shape[2]
    d_k = D // num_heads
    scale = 1.0 / math.sqrt(d_k)

    # -- first K/V tile: project Q once per q-tile, init online-softmax state --
    @pl.when(skv == 0)
    def _init():
        xq = xq_ref[0]                                         # (TQ, D) f32
        q = jnp.dot(xq.astype(BF16), wq_ref[...], preferred_element_type=F32)
        q = (q + bq_ref[...]) * scale
        for h in range(num_heads):                             # head-split store
            q_sc[h] = q[:, h * d_k:(h + 1) * d_k].astype(BF16)
        m_sc[...] = jnp.full(m_sc.shape, -jnp.inf, F32)
        l_sc[...] = jnp.zeros(l_sc.shape, F32)
        acc_sc[...] = jnp.zeros(acc_sc.shape, F32)

    # -- one K/V tile of attention, batched over heads on the MXU --------------
    q = q_sc[...]                                              # (H, TQ, d_k) bf16
    k = k_ref[0]                                               # (H, TKV, d_k) bf16
    v = v_ref[0]                                               # (H, TKV, d_k) bf16

    s = lax.dot_general(q, k, (((2,), (2,)), ((0,), (0,))),
                        preferred_element_type=F32)            # (H, TQ, TKV)
    m_prev = m_sc[...]
    m_new = jnp.maximum(m_prev, jnp.max(s, axis=-1, keepdims=True))
    alpha = jnp.exp(m_prev - m_new)
    p = jnp.exp(s - m_new)
    l_sc[...] = alpha * l_sc[...] + jnp.sum(p, axis=-1, keepdims=True)
    pv = lax.dot_general(p.astype(BF16), v, (((2,), (1,)), ((0,), (0,))),
                         preferred_element_type=F32)           # (H, TQ, d_k)
    acc_sc[...] = alpha * acc_sc[...] + pv
    m_sc[...] = m_new

    # -- last K/V tile: normalize, single Wo matmul, LN1, FFN, LN2, store ------
    @pl.when(skv == n_kv - 1)
    def _finalize():
        heads = acc_sc[...] / l_sc[...]                        # exact normalize
        for h in range(num_heads):                             # concat via lane cols
            cat_sc[:, h * d_k:(h + 1) * d_k] = heads[h].astype(BF16)
        attn = jnp.dot(cat_sc[...], wo_ref[...],
                       preferred_element_type=F32) + bo_ref[...]

        xq = xq_ref[0]
        x1 = _layernorm(xq + attn, g1_ref[...], be1_ref[...])

        h1 = jnp.dot(x1.astype(BF16), w1_ref[...],
                     preferred_element_type=F32) + b1_ref[...]
        h1 = jnp.maximum(h1, 0.0)
        ff = jnp.dot(h1.astype(BF16), w2_ref[...],
                     preferred_element_type=F32) + b2_ref[...]

        x2 = _layernorm(x1 + ff, g2_ref[...], be2_ref[...])
        o_ref[0] = x2.astype(o_ref.dtype)


def _nbytes(a):
    return int(a.size) * a.dtype.itemsize


def encoder_layer(x, params, num_heads, q_tile=None, kv_tile=None):
    """x: (B, S, D) float32. params: dict of weights (see init_params)."""
    B, S, D = x.shape
    assert D % num_heads == 0, "d_model must be divisible by num_heads"
    d_k = D // num_heads

    # TQ=256 fills the v6e/v7x 256-wide MXU; pass q_tile=128 on v5e.
    TQ = q_tile if q_tile is not None else min(S, 256)
    TKV = kv_tile if kv_tile is not None else min(S, 512)
    assert S % TQ == 0 and S % TKV == 0, "S must be divisible by the tiles"
    n_q, n_kv = S // TQ, S // TKV

    # Cast matmul weights to bf16 once; biases / LN params stay f32.
    wq = params["wq"].astype(BF16)
    wo = params["wo"].astype(BF16)
    w1 = params["w1"].astype(BF16)
    w2 = params["w2"].astype(BF16)
    wkv = jnp.concatenate([params["wk"], params["wv"]], axis=1).astype(BF16)
    bkv = jnp.concatenate([params["bk"], params["bv"]], axis=1)

    def vmem():
        # grid-invariant whole-array operand resident in VMEM
        return pl.BlockSpec(memory_space=pltpu.MemorySpace.VMEM)

    # ---- K/V projection pass (once per (batch, seq-tile)) -------------------
    TS = min(S, 256)
    assert S % TS == 0
    kv_out_shape = jax.ShapeDtypeStruct((B, num_heads, S, d_k), BF16)

    proj_resident = _nbytes(wkv) + _nbytes(bkv)
    proj_blocked = 2 * (TS * D * 4 + 2 * num_heads * TS * d_k * 2)
    proj_limit = int(min(max(1.5 * (proj_resident + proj_blocked) + (4 << 20),
                             16 << 20), 64 << 20))

    k, v = pl.pallas_call(
        functools.partial(kv_proj_kernel, num_heads=num_heads),
        out_shape=(kv_out_shape, kv_out_shape),
        grid_spec=pltpu.PrefetchScalarGridSpec(
            num_scalar_prefetch=0,
            grid=(B, S // TS),
            in_specs=[
                pl.BlockSpec((1, TS, D), lambda b, s: (b, s, 0)),
                vmem(), vmem(),
            ],
            out_specs=(
                pl.BlockSpec((1, num_heads, TS, d_k), lambda b, s: (b, 0, s, 0)),
                pl.BlockSpec((1, num_heads, TS, d_k), lambda b, s: (b, 0, s, 0)),
            ),
        ),
        compiler_params=pltpu.CompilerParams(
            dimension_semantics=("parallel", "parallel"),
            vmem_limit_bytes=proj_limit),
    )(x, wkv, bkv)

    # ---- fused encoder layer -------------------------------------------------
    weight_args = (wq, params["bq"], wo, params["bo"],
                   params["gamma1"], params["beta1"],
                   w1, params["b1"], w2, params["b2"],
                   params["gamma2"], params["beta2"])

    resident = sum(_nbytes(w) for w in weight_args)
    blocked = 2 * (TQ * D * 4                      # xq block (double-buffered)
                   + 2 * num_heads * TKV * d_k * 2 # k + v blocks (bf16)
                   + TQ * D * 4)                   # output block
    scratch = (num_heads * TQ * d_k * (2 + 4)      # q_sc bf16 + acc f32
               + 2 * num_heads * TQ * 4            # m, l
               + TQ * D * 2)                       # cat_sc bf16
    vmem_limit = int(min(max(1.5 * (resident + blocked + scratch) + (4 << 20),
                             16 << 20), 64 << 20))

    return pl.pallas_call(
        functools.partial(encoder_layer_kernel, num_heads=num_heads),
        out_shape=jax.ShapeDtypeStruct((B, S, D), jnp.float32),
        grid_spec=pltpu.PrefetchScalarGridSpec(
            num_scalar_prefetch=0,
            grid=(B, n_q, n_kv),
            in_specs=[
                pl.BlockSpec((1, TQ, D), lambda b, sq, sk: (b, sq, 0)),
                pl.BlockSpec((1, num_heads, TKV, d_k),
                             lambda b, sq, sk: (b, 0, sk, 0)),
                pl.BlockSpec((1, num_heads, TKV, d_k),
                             lambda b, sq, sk: (b, 0, sk, 0)),
            ] + [vmem() for _ in range(12)],
            out_specs=pl.BlockSpec((1, TQ, D), lambda b, sq, sk: (b, sq, 0)),
            scratch_shapes=[
                pltpu.VMEM((num_heads, TQ, d_k), BF16),   # q (scaled, bf16)
                pltpu.VMEM((num_heads, TQ, 1), F32),      # m (running max)
                pltpu.VMEM((num_heads, TQ, 1), F32),      # l (running denom)
                pltpu.VMEM((num_heads, TQ, d_k), F32),    # acc (running PV)
                pltpu.VMEM((TQ, D), BF16),                # head concat
            ],
        ),
        compiler_params=pltpu.CompilerParams(
            dimension_semantics=("parallel", "parallel", "arbitrary"),
            vmem_limit_bytes=vmem_limit),
    )(x, k, v, *weight_args)


def init_params(key, d_model, d_ff):
    """Deterministic init mimicking nn.Linear default U(-1/sqrt(fan_in), +)."""
    ks = jax.random.split(key, 6)

    def lin(k, fan_in, fan_out):
        bound = 1.0 / math.sqrt(fan_in)
        kw, kb = jax.random.split(k)
        w = jax.random.uniform(kw, (fan_in, fan_out), jnp.float32, -bound, bound)
        b = jax.random.uniform(kb, (1, fan_out), jnp.float32, -bound, bound)
        return w, b

    wq, bq = lin(ks[0], d_model, d_model)
    wk, bk = lin(ks[1], d_model, d_model)
    wv, bv = lin(ks[2], d_model, d_model)
    wo, bo = lin(ks[3], d_model, d_model)
    w1, b1 = lin(ks[4], d_model, d_ff)
    w2, b2 = lin(ks[5], d_ff, d_model)
    return dict(
        wq=wq, bq=bq, wk=wk, bk=bk, wv=wv, bv=bv, wo=wo, bo=bo,
        w1=w1, b1=b1, w2=w2, b2=b2,
        gamma1=jnp.ones((1, d_model), jnp.float32),
        beta1=jnp.zeros((1, d_model), jnp.float32),
        gamma2=jnp.ones((1, d_model), jnp.float32),
        beta2=jnp.zeros((1, d_model), jnp.float32),
    )


def encoder_layer_ref(x, p, num_heads):
    """Pure-JAX f32 reference for validation."""
    B, S, D = x.shape
    d_k = D // num_heads

    def proj(z, w, b):
        return z @ w + b[0]

    q = proj(x, p["wq"], p["bq"]).reshape(B, S, num_heads, d_k).transpose(0, 2, 1, 3)
    k = proj(x, p["wk"], p["bk"]).reshape(B, S, num_heads, d_k).transpose(0, 2, 1, 3)
    v = proj(x, p["wv"], p["bv"]).reshape(B, S, num_heads, d_k).transpose(0, 2, 1, 3)
    scores = jnp.einsum("bhqd,bhkd->bhqk", q, k) / math.sqrt(d_k)
    probs = jax.nn.softmax(scores, axis=-1)
    attn = jnp.einsum("bhqk,bhkd->bhqd", probs, v).transpose(0, 2, 1, 3).reshape(B, S, D)
    attn = proj(attn, p["wo"], p["bo"])

    def ln(z, g, b, eps=1e-5):
        m = jnp.mean(z, -1, keepdims=True)
        var = jnp.mean((z - m) ** 2, -1, keepdims=True)
        return (z - m) / jnp.sqrt(var + eps) * g[0] + b[0]

    x1 = ln(x + attn, p["gamma1"], p["beta1"])
    ff = jnp.maximum(x1 @ p["w1"] + p["b1"][0], 0.0) @ p["w2"] + p["b2"][0]
    return ln(x1 + ff, p["gamma2"], p["beta2"])


if __name__ == "__main__":
    B, S, D = 2, 16, 32          # batch, seq, d_model (small, toy config)
    NUM_HEADS = 2
    D_FF = 128

    key = jax.random.PRNGKey(0)
    kx, kp = jax.random.split(key)
    x = jax.random.normal(kx, (B, S, D), jnp.float32)
    params = init_params(kp, D, D_FF)

    # small tiles so the (batch, q-tile, kv-tile) grid is actually exercised
    out = encoder_layer(x, params, NUM_HEADS, q_tile=8, kv_tile=8)
    out = jax.block_until_ready(out)

    ref = encoder_layer_ref(x, params, NUM_HEADS)
    assert out.shape == (B, S, D)
    # Tolerance reflects bf16 MXU operands vs the f32 reference.
    max_err = float(jnp.max(jnp.abs(out - ref)))
    assert jnp.allclose(out, ref, atol=3e-2, rtol=3e-2), max_err

    print("KERNEL_OK")
</pallas_src>

<mosaic_0001>
module attributes {stable_mosaic.version = 11 : i64} {
  func.func @kv_proj_kernel(%arg0: i32, %arg1: i32, %arg2: memref<1x16x32xf32, #tpu.memory_space<vmem>>, %arg3: memref<32x64xbf16, #tpu.memory_space<vmem>>, %arg4: memref<1x64xf32, #tpu.memory_space<vmem>>, %arg5: memref<1x2x16x16xbf16, #tpu.memory_space<vmem>>, %arg6: memref<1x2x16x16xbf16, #tpu.memory_space<vmem>>) attributes {dimension_semantics = [#tpu.dimension_semantics<parallel>, #tpu.dimension_semantics<parallel>], iteration_bounds = array<i64: 2, 1>, scalar_prefetch = 0 : i64, scratch_operands = 0 : i64, tpu.core_type = #tpu.core_type<tc>, window_params = [{transform_indices = @transform_0, window_bounds = array<i64: 1, 16, 32>}, {pipeline_mode = #tpu.pipeline_mode<synchronous>, transform_indices = @transform_1, window_bounds = array<i64: 32, 64>}, {pipeline_mode = #tpu.pipeline_mode<synchronous>, transform_indices = @transform_2, window_bounds = array<i64: 1, 64>}, {transform_indices = @transform_3, window_bounds = array<i64: 1, 2, 16, 16>}, {transform_indices = @transform_4, window_bounds = array<i64: 1, 2, 16, 16>}]} {
    %c0 = arith.constant 0 : index
    %c0_0 = arith.constant 0 : index
    %c0_1 = arith.constant 0 : index
    %0 = vector.load %arg2[%c0, %c0_0, %c0_1] : memref<1x16x32xf32, #tpu.memory_space<vmem>>, vector<1x16x32xf32>
    %1 = vector.shape_cast %0 : vector<1x16x32xf32> to vector<16x32xf32>
    %2 = arith.truncf %1 : vector<16x32xf32> to vector<16x32xbf16>
    %c0_2 = arith.constant 0 : index
    %c0_3 = arith.constant 0 : index
    %3 = vector.load %arg3[%c0_2, %c0_3] : memref<32x64xbf16, #tpu.memory_space<vmem>>, vector<32x64xbf16>
    %cst = arith.constant dense<0.000000e+00> : vector<16x64xf32>
    %4 = tpu.matmul %2, %3, %cst {dimension_numbers = #tpu.dot_dimension_numbers<[1], [0], [0], [1], [0, 0, 1, 1], [], []>} : vector<16x32xbf16>, vector<32x64xbf16>, vector<16x64xf32> -> vector<16x64xf32>
    %c0_4 = arith.constant 0 : index
    %c0_5 = arith.constant 0 : index
    %5 = vector.load %arg4[%c0_4, %c0_5] : memref<1x64xf32, #tpu.memory_space<vmem>>, vector<1x64xf32>
    %6 = vector.broadcast %5 : vector<1x64xf32> to vector<16x64xf32>
    %7 = arith.addf %4, %6 : vector<16x64xf32>
    %8 = vector.extract_strided_slice %7 {offsets = [0, 0], sizes = [16, 32], strides = [1, 1]} : vector<16x64xf32> to vector<16x32xf32>
    %9 = vector.extract_strided_slice %7 {offsets = [0, 32], sizes = [16, 32], strides = [1, 1]} : vector<16x64xf32> to vector<16x32xf32>
    %10 = vector.extract_strided_slice %8 {offsets = [0, 0], sizes = [16, 16], strides = [1, 1]} : vector<16x32xf32> to vector<16x16xf32>
    %11 = arith.truncf %10 : vector<16x16xf32> to vector<16x16xbf16>
    %c0_6 = arith.constant 0 : index
    %c0_7 = arith.constant 0 : index
    %c0_8 = arith.constant 0 : index
    %c0_9 = arith.constant 0 : index
    %12 = vector.load %arg5[%c0_6, %c0_7, %c0_8, %c0_9] : memref<1x2x16x16xbf16, #tpu.memory_space<vmem>>, vector<1x1x16x16xbf16>
    %13 = vector.shape_cast %12 : vector<1x1x16x16xbf16> to vector<16x16xbf16>
    %14 = vector.shape_cast %11 : vector<16x16xbf16> to vector<1x1x16x16xbf16>
    tpu.vector_store %arg5[%c0_6, %c0_7, %c0_8, %c0_9], %14 {strides = array<i32>} : memref<1x2x16x16xbf16, #tpu.memory_space<vmem>>, vector<1x1x16x16xbf16>,
    %15 = vector.extract_strided_slice %9 {offsets = [0, 0], sizes = [16, 16], strides = [1, 1]} : vector<16x32xf32> to vector<16x16xf32>
    %16 = arith.truncf %15 : vector<16x16xf32> to vector<16x16xbf16>
    %c0_10 = arith.constant 0 : index
    %c0_11 = arith.constant 0 : index
    %c0_12 = arith.constant 0 : index
    %c0_13 = arith.constant 0 : index
    %17 = vector.load %arg6[%c0_10, %c0_11, %c0_12, %c0_13] : memref<1x2x16x16xbf16, #tpu.memory_space<vmem>>, vector<1x1x16x16xbf16>
    %18 = vector.shape_cast %17 : vector<1x1x16x16xbf16> to vector<16x16xbf16>
    %19 = vector.shape_cast %16 : vector<16x16xbf16> to vector<1x1x16x16xbf16>
    tpu.vector_store %arg6[%c0_10, %c0_11, %c0_12, %c0_13], %19 {strides = array<i32>} : memref<1x2x16x16xbf16, #tpu.memory_space<vmem>>, vector<1x1x16x16xbf16>,
    %20 = vector.extract_strided_slice %8 {offsets = [0, 16], sizes = [16, 16], strides = [1, 1]} : vector<16x32xf32> to vector<16x16xf32>
    %21 = arith.truncf %20 : vector<16x16xf32> to vector<16x16xbf16>
    %c0_14 = arith.constant 0 : index
    %c1 = arith.constant 1 : index
    %c0_15 = arith.constant 0 : index
    %c0_16 = arith.constant 0 : index
    %22 = vector.load %arg5[%c0_14, %c1, %c0_15, %c0_16] : memref<1x2x16x16xbf16, #tpu.memory_space<vmem>>, vector<1x1x16x16xbf16>
    %23 = vector.shape_cast %22 : vector<1x1x16x16xbf16> to vector<16x16xbf16>
    %24 = vector.shape_cast %21 : vector<16x16xbf16> to vector<1x1x16x16xbf16>
    tpu.vector_store %arg5[%c0_14, %c1, %c0_15, %c0_16], %24 {strides = array<i32>} : memref<1x2x16x16xbf16, #tpu.memory_space<vmem>>, vector<1x1x16x16xbf16>,
    %25 = vector.extract_strided_slice %9 {offsets = [0, 16], sizes = [16, 16], strides = [1, 1]} : vector<16x32xf32> to vector<16x16xf32>
    %26 = arith.truncf %25 : vector<16x16xf32> to vector<16x16xbf16>
    %c0_17 = arith.constant 0 : index
    %c1_18 = arith.constant 1 : index
    %c0_19 = arith.constant 0 : index
    %c0_20 = arith.constant 0 : index
    %27 = vector.load %arg6[%c0_17, %c1_18, %c0_19, %c0_20] : memref<1x2x16x16xbf16, #tpu.memory_space<vmem>>, vector<1x1x16x16xbf16>
    %28 = vector.shape_cast %27 : vector<1x1x16x16xbf16> to vector<16x16xbf16>
    %29 = vector.shape_cast %26 : vector<16x16xbf16> to vector<1x1x16x16xbf16>
    tpu.vector_store %arg6[%c0_17, %c1_18, %c0_19, %c0_20], %29 {strides = array<i32>} : memref<1x2x16x16xbf16, #tpu.memory_space<vmem>>, vector<1x1x16x16xbf16>,
    return
  }
  func.func @transform_0(%arg0: i32, %arg1: i32) -> (i32, i32, i32) {
    %c0_i32 = arith.constant 0 : i32
    %c0_i32_0 = arith.constant 0 : i32
    return %arg0, %arg1, %c0_i32 : i32, i32, i32
  }
  func.func @transform_1(%arg0: i32, %arg1: i32) -> (i32, i32) {
    %c0_i32 = arith.constant 0 : i32
    %c0_i32_0 = arith.constant 0 : i32
    %c0_i32_1 = arith.constant 0 : i32
    return %c0_i32, %c0_i32_0 : i32, i32
  }
  func.func @transform_2(%arg0: i32, %arg1: i32) -> (i32, i32) {
    %c0_i32 = arith.constant 0 : i32
    %c0_i32_0 = arith.constant 0 : i32
    %c0_i32_1 = arith.constant 0 : i32
    return %c0_i32, %c0_i32_0 : i32, i32
  }
  func.func @transform_3(%arg0: i32, %arg1: i32) -> (i32, i32, i32, i32) {
    %c0_i32 = arith.constant 0 : i32
    %c0_i32_0 = arith.constant 0 : i32
    %c0_i32_1 = arith.constant 0 : i32
    return %arg0, %c0_i32, %arg1, %c0_i32_0 : i32, i32, i32, i32
  }
  func.func @transform_4(%arg0: i32, %arg1: i32) -> (i32, i32, i32, i32) {
    %c0_i32 = arith.constant 0 : i32
    %c0_i32_0 = arith.constant 0 : i32
    %c0_i32_1 = arith.constant 0 : i32
    return %arg0, %c0_i32, %arg1, %c0_i32_0 : i32, i32, i32, i32
  }
}

</mosaic_0001>

<bundles_post_ra>
// kernel: tpu_custom_call.1
= control target key start
LH: loop header
LB: loop body
LE: loop exit
PB: predicated region body
PF: predicated region fallthrough
CT: control target
= control target key end

     0   :  { %10 = vsyncpa [#allocation3], 0  ;;  %s1184_s0 = inlined_call_operand.hbm [shape: f32[2,16,32], index: 0, kind: input, shape index: {}]   ;;  %s1185_s1 = inlined_call_operand.hbm [shape: bf16[32,64], index: 1, kind: input, shape index: {}]   ;;  %s1186_s2 = inlined_call_operand.vmem [shape: f32[1,64], index: 2, kind: input, shape index: {}]   ;;  %s1187_s3 = inlined_call_operand.hbm [shape: bf16[2,2,16,16], index: 3, kind: output, shape index: {0}]   ;;  %s1188_s4 = inlined_call_operand.hbm [shape: bf16[2,2,16,16], index: 4, kind: output, shape index: {1}]  }
   0x1   :  { %12 = vsyncpa [#allocation3 + $0x1], 0 }
   0x2   :  { %13 = vsyncpa [#allocation6], 0 }
   0x3   :  { %14 = vsyncpa [#allocation4], 0 }
   0x4   :  { %16 = vsyncpa [#allocation4 + $0x1], 0 }
   0x5   :  { %17 = vsyncpa [#allocation9], 0 }
   0x6   :  { %19 = vsyncpa [#allocation9 + $0x1], 0  ;;  %s901_s15 = smov 0   ;;  %s903_s16 = smov 0  }
   0x7   :  { %s905_s17 = smov 0   ;;  %s907_s18 = smov 0  }
   0x8   :  { %s909_s19 = smov 0   ;;  %s911_s20 = smov 0  }
   0x9 LB: > { %s545_s21 = sadd.s32 4294967295, %s859_s20   ;;  %s546_s22 = sadd.s32 4294967294, %s859_s20   ;;  %s859_s20 = sphi %s911_s20, %s25_s20   ;;  %s855_s19 = sphi %s909_s19, %s1212_s19   ;;  %s851_s18 = sphi %s907_s18, %s1211_s18   ;;  %s847_s17 = sphi %s905_s17, %s1210_s17   ;;  %s843_s16 = sphi %s903_s16, %s1209_s16   ;;  %s839_s15 = sphi %s901_s15, %s1208_s15  }
   0xa   : > { %p59_p0 = scmp.ne.s32.totalorder %s843_s16, %s839_s15  ;;  %p935_p1 = scmp.eq.s32.totalorder %s545_s21, 0 }
   0xb   : > { %p939_p2 = scmp.eq.s32.totalorder %s545_s21, 1  ;;  %p133_p3 = scmp.eq.s32.totalorder %s546_s22, 1 }
   0xc   : > { %s1193_s23 = scalar_select %p935_p1, 1, 0 }
   0xd   : > { %s1194_s24 = scalar_select %p939_p2, 1, 0 }
   0xe   : > { %p945_p4 = por %p935_p1, %p59_p0  ;;  %p547_p5 = scmp.ge.s32.totalorder %s859_s20, 1 }
   0xf   : > { %p950_p6 = por %p133_p3, %p59_p0  ;;  %p168_p7 = scmp.lt.s32.totalorder %s859_s20, 3 }
  0x10   : > { %s1195_s25 = scalar_select %p945_p4, 1, 0 }
  0x11   : > { %s1196_s26 = scalar_select %p950_p6, 1, 0 }
  0x12   : > { %p955_p8 = pnand %p547_p5, %p168_p7  ;;  %s861_s28 = smov [#allocation5]  }
  0x13   : > { %s180_s29 = sshll.u32 %s861_s28, 4  ;;  %s37_s5 = sadd.s32 1, %s855_s19  ;;  %s181_s29 = int_to_ptr.vmem [resolvable:$true] %s180_s29 }
  0x14   : > { %s1197_s27 = scalar_select %p955_p8, 1, 0 }
  0x15   : > { %p602_p9 = pneg %p955_p8  ;;  %s683_s8 = scalar_lea.hbm %s1185_s1, 256 }
  0x16   : > { %p684_p12 = scmp.ne.s32.totalorder %s1185_s1, %s683_s8  ;;  %p690_p5 = scmp.lt.u32.totalorder %s683_s8, %s1185_s1 }
  0x17   : > { %p964_p11 = pnand %p602_p9, %p935_p1 }
  0x19   : > { %p685_p13 = pneg %p964_p11 }
  0x1b   : > { %p686_p0 = pnand %p685_p13, %p684_p12 }
  0x1d   : > { %p687_p3 = pneg %p686_p0 }
  0x1f   : > { %p692_p7 = pnand %p690_p5, %p687_p3 }
  0x21   : > { %695 = shalt.err (!%p692_p7)
}
  0x22   : > { %s696_s13 = scalar_lea.vmem %s181_s29, 256  ;;  %p704_p1 = scmp.lt.s32.totalorder %s181_s29, %s181_s29 }
  0x23   : > { %p697_p9 = scmp.ne.s32.totalorder %s181_s29, %s696_s13  ;;  %p705_p4 = scmp.lt.s32.totalorder %s696_s13, %s696_s13 }
  0x25   : > { %p699_p10 = pnand %p697_p9, %p685_p13  ;;  %p706_p8 = por %p705_p4, %p704_p1 }
  0x27   : > { %p700_p6 = pneg %p699_p10 }
  0x29   : > { %p707_p2 = pnand %p706_p8, %p700_p6 }
  0x2b   : > { %710 = shalt.err (!%p707_p2)
}
  0x2c   : > { %s862_s14 = smov 64   ;;  %s863_s21 = smov 4  }
  0x2d   : > { %605 = dma.hbm_to_vmem [thread:$0]  (!%p964_p11), %s1185_s1, 256, %s181_s29, [#allocation6], %s862_s14, %s862_s14, %s863_s21  }
  0x2e   : > { %p39_p1 = scmp.ge.s32.totalorder %s37_s5, 2  ;;  %s46_s6 = sadd.s32 1, %s847_s17 }
  0x2f   : > { %p53_p2 = scmp.ne.s32.totalorder %s847_s17, %s843_s16  ;;  %p54_p4 = scmp.eq.s32.totalorder %s859_s20, 0 }
  0x30   : > { %s1214_s5 = smov (%p39_p1, %s37_s5), 0  ;;  %p1200_p8 = scmp.ne.s32.totalorder %s1194_s24, 0 }
  0x31   : > { %p991_p6 = por %p54_p4, %p53_p2  ;;  %s41_s30 = ssub.s32 %s855_s19, %s1214_s5 }
  0x32   : > { %p997_p10 = por %p1200_p8, %p53_p2  ;;  %p618_p12 = scmp.lt.s32.totalorder %s859_s20, 2 }
  0x33   : > { %p44_p11 = scmp.eq.s32.totalorder %s41_s30, 0  ;;  %s197_s29 = sand.u32 1, %s847_s17  }
  0x34   : > { %s550_s9 = sshll.u32 %s197_s29, 4  ;;  %s576_s11 = sshll.u32 %s855_s19, 8 }
  0x35   : > { %s1006_s10 = scalar_select %p44_p11, %s847_s17, %s46_s6  }
  0x36   : > { %s1012_s14 = scalar_lea.hbm %s1184_s0, %s576_s11  ;;  %s201_s24 = scalar_lea.vmem [#allocation2], %s550_s9 }
  0x37   : > { %s210_s21 = sshll.u32 %s201_s24, 4  ;;  %p1018_p13 = pnand %p618_p12, %p991_p6  ;;  %s1014_s21 = int_to_ptr.vmem [resolvable:$true] %s210_s21 }
  0x38   : > { %s1022_s28 = scalar_lea.sflag [#allocation3], %s197_s29  ;;  %s711_s6 = scalar_lea.hbm %s1012_s14, 256 }
  0x39   : > { %p712_p0 = scmp.ne.s32.totalorder %s1012_s14, %s711_s6  ;;  %p713_p3 = pneg %p1018_p13 }
  0x3a   : > { %s716_s7 = scalar_lea.hbm %s1184_s0, 512  ;;  %p717_p9 = scmp.lt.u32.totalorder %s1012_s14, %s1184_s0 }
  0x3b   : > { %p714_p5 = pnand %p713_p3, %p712_p0  ;;  %p718_p1 = scmp.lt.u32.totalorder %s716_s7, %s711_s6 }
  0x3c   : > { %p720_p4 = scmp.lt.u32.totalorder %s711_s6, %s1012_s14 }
  0x3d   : > { %p715_p7 = pneg %p714_p5  ;;  %p719_p2 = por %p718_p1, %p717_p9 }
  0x3f   : > { %p721_p6 = por %p720_p4, %p719_p2 }
  0x41   : > { %p722_p8 = pnand %p721_p6, %p715_p7 }
  0x43   : > { %725 = shalt.err (!%p722_p8)
}
  0x44   : > { %s726_s29 = scalar_lea.vmem %s1014_s21, 256  ;;  %s864_s13 = smov [#allocation2]  }
  0x45   : > { %p727_p12 = scmp.ne.s32.totalorder %s1014_s21, %s726_s29  ;;  %s731_s24 = sshll.u32 %s864_s13, 4  ;;  %s732_s24 = int_to_ptr.vmem [resolvable:$false] %s731_s24 }
  0x46   : > { %s733_s30 = scalar_lea.vmem %s732_s24, 512  ;;  %p734_p5 = scmp.lt.s32.totalorder %s1014_s21, %s732_s24 }
  0x47   : > { %p729_p11 = pnand %p727_p12, %p713_p3  ;;  %p735_p9 = scmp.lt.s32.totalorder %s733_s30, %s726_s29 }
  0x49   : > { %p730_p0 = pneg %p729_p11  ;;  %p736_p1 = por %p735_p9, %p734_p5 }
  0x4b   : > { %p737_p2 = pnand %p736_p1, %p730_p0 }
  0x4d   : > { %740 = shalt.err (!%p737_p2)
}
  0x4e   : > { %s865_s6 = smov 128   ;;  %s866_s9 = smov 8  }
  0x4f   : > { %609 = dma.hbm_to_vmem [thread:$0]  (!%p1018_p13), %s1012_s14, 256, %s1014_s21, %s1022_s28, %s865_s6, %s865_s6, %s866_s9  }
  0x50   : > { %p1203_p3 = scmp.ne.s32.totalorder %s1197_s27, 0 }
  0x51   : > { %s1053_s7 = sand.u32 (!%p1203_p3), 1, %s843_s16   ;;  %p1204_p7 = scmp.ne.s32.totalorder (!%p1203_p3), %s1195_s25, 0 }
  0x52   : > { %222 = sbr.rel (%p1203_p3) target bundleno = 475 (0x1db), region = 32  ;;  %s1056_s11 = sshll.u32 (!%p1203_p3), %s1053_s7, 4 }
  0x53   : > { %s225_s12 = scalar_lea.sflag (!%p1203_p3), [#allocation3], %s1053_s7  ;;  %s228_s29 = scalar_lea.vmem (!%p1203_p3), [#allocation2], %s1056_s11 }
  0x59   : > { %822 = dma.done.wait (%p1204_p7), %s225_s12, 256  }
  0x5a   : > { %824 = vsyncadd (%p1204_p7), %s225_s12, 4294967040  ;;  %p1205_p13 = scmp.ne.s32.totalorder %s1193_s23, 0 }
  0x5c   : > { %826 = dma.done.wait (%p1205_p13), [#allocation6], 256  }
  0x5d   : > { %828 = vsyncadd (%p1205_p13), [#allocation6], 4294967040  ;;  %v867_v0 = vmov 0.0   ;;  %vm868_vm0 = vmmov 0   ;;  %v681_v1 = vld [vmem:[#allocation5] sm:$0xff]   ;;  %v682_v2 = vld [vmem:[#allocation5 + $0x8] sm:$0xff]  }
  0x5e   : > { %584 = vmatprep.subr.bf16.mxu0 %v867_v0  ;;  %588 = vmatprep.mubr.msk.bf16.mxu0 %vm868_vm0, %v867_v0  ;;  %v266_v3 = vld [vmem:[%s228_s29] sm:$0xff]  ;;  %v267_v4 = vld [vmem:[%s228_s29 + $0x8] sm:$0xff]  ;;  %vm292_vm1 = vcmask 261120   ;;  %vm345_vm2 = vcmask 125952   ;;  %s254_s23 = scalar_lea.vmem [#allocation7], %s1056_s11  ;;  %s869_s14 = smov 112  }
  0x5f   : > { %585 = vmatpush3.bf16.msra.mxu0 %v681_v1  ;;  %v268_v5 = vpack.c.bf16 %v267_v4, %v266_v3  ;;  %v558_v6 = vld [vmem:[%s1186_s2] ss:$0 sm:$0xff]  ;;  %s870_s21 = smov 96   ;;  %s871_s22 = smov 80  }
  0x60   : > { %586 = vmatprep.subr.bf16.mxu0 %v867_v0  ;;  %s395_s28 = sshll.u32 %s254_s23, 4  ;;  %s579_s13 = sshll.u32 %s851_s18, 8  ;;  %s1075_s28 = int_to_ptr.vmem [resolvable:$true] %s395_s28 }
  0x61   : > { %s1079_s24 = scalar_lea.vmem [#allocation8], %s1056_s11  ;;  %s1089_s12 = scalar_lea.hbm %s1187_s3, %s579_s13 }
  0x62   : > { %s413_s30 = sshll.u32 %s1079_s24, 4  ;;  %s375_s11 = scalar_lea.sflag [#allocation4], %s1053_s7  ;;  %s1091_s30 = int_to_ptr.vmem [resolvable:$true] %s413_s30 }
  0x63   : > { %587 = vmatpush3.bf16.msra.mxu0 %v682_v2  ;;  %s741_s29 = scalar_lea.vmem %s1075_s28, 256  ;;  %s872_s25 = smov [#allocation7]  }
  0x64   : > { %p742_p4 = scmp.ne.s32.totalorder %s1075_s28, %s741_s29  ;;  %s745_s27 = sshll.u32 %s872_s25, 4  ;;  %s746_s27 = int_to_ptr.vmem [resolvable:$false] %s745_s27 }
  0x65   : > { %p748_p12 = scmp.lt.s32.totalorder %s1075_s28, %s746_s27 }
  0x66   : > { %589 = vmatmul.mubr.msk.bf16.vlgmr.msra.gmra.mrb[0].mxu0 %vm292_vm1, %v268_v5  ;;  %p743_p6 = pnand %p742_p4, %p997_p10 }
  0x68   : > { %p744_p8 = pneg %p743_p6 }
 0x139   : > { %v330_v7 = vpop.f32.mrb[0].mxu0 }
 0x13a   : > { %v331_v8 = vadd.f32 %v558_v6, %v330_v7  ;;  %v590_v9 = vpop.f32.mrb[1].mxu0 }
 0x13b   : > { %v333_v10 = vpop.f32.mrb[2].mxu0 }
 0x13c   : > { %v577_v11 = vpack.c.bf16 %v331_v8, %v331_v8  ;;  %v334_v12 = vadd.f32 %v558_v6, %v333_v10  ;;  %v591_v13 = vpop.f32.mrb[3].mxu0 }
 0x13e   : > { %346 = vst.msk [vmem:[%s254_s23] sm:$0xf] %vm345_vm2, %v577_v11  ;;  %v578_v14 = vpack.c.bf16 %v334_v12, %v334_v12  ;;  %356 = vrot.lane.b32.xlu1 %v577_v11, %s869_s14  ;;  %348 = vrot.lane.b32.xlu0 %v577_v11, %s870_s21 }
 0x140   : > { %347 = vst.msk [vmem:[%s254_s23 + $0x4] sm:$0xf] %vm345_vm2, %v578_v14 }
 0x142   : > { %358 = vrot.lane.b32.xlu1 %v578_v14, %s869_s14  ;;  %350 = vrot.lane.b32.xlu0 %v578_v14, %s870_s21  ;;  %s747_s14 = scalar_lea.vmem %s746_s27, 512 }
 0x143   : > { %p749_p11 = scmp.lt.s32.totalorder %s747_s14, %s741_s29 }
 0x145   : > { %p750_p0 = por %p749_p11, %p748_p12 }
 0x146   : > { %367 = vrot.lane.b32.xlu1 %v578_v14, %s871_s22  ;;  %365 = vrot.lane.b32.xlu0 %v577_v11, %s871_s22 }
 0x147   : > { %p751_p5 = pnand %p750_p0, %p744_p8 }
 0x1b0   : > { %v357_v15 = vpop.permute.xlu1 %356  ;;  %v349_v16 = vpop.permute.xlu0 %348 }
 0x1b1   : > { %564 = vst.msk [vmem:[%s254_s23 + $0x8] sm:$0xf] %vm345_vm2, %v357_v15  ;;  %354 = vst.msk [vmem:[%s1079_s24] sm:$0xf] %vm345_vm2, %v349_v16 }
 0x1b4   : > { %v359_v17 = vpop.permute.xlu1 %358  ;;  %v351_v18 = vpop.permute.xlu0 %350 }
 0x1b5   : > { %565 = vst.msk [vmem:[%s254_s23 + $0xc] sm:$0xf] %vm345_vm2, %v359_v17  ;;  %355 = vst.msk [vmem:[%s1079_s24 + $0x4] sm:$0xf] %vm345_vm2, %v351_v18 }
 0x1b6   : > { %754 = shalt.err (!%p751_p5)
}
 0x1b7   : > { %s755_s23 = scalar_lea.hbm %s1089_s12, 256  ;;  %s759_s6 = scalar_lea.hbm %s1187_s3, 512 }
 0x1b8   : > { %p756_p9 = scmp.ne.s32.totalorder %s1089_s12, %s755_s23  ;;  %p760_p3 = scmp.lt.u32.totalorder %s1089_s12, %s1187_s3 }
 0x1b9   : > { %p761_p7 = scmp.lt.u32.totalorder %s759_s6, %s755_s23  ;;  %p763_p4 = scmp.lt.u32.totalorder %s755_s23, %s1089_s12 }
 0x1ba   : > { %p757_p1 = pnand %p756_p9, %p997_p10 }
 0x1bb   : > { %p762_p13 = por %p761_p7, %p760_p3 }
 0x1bc   : > { %p758_p2 = pneg %p757_p1 }
 0x1bd   : > { %p764_p6 = por %p763_p4, %p762_p13 }
 0x1bf   : > { %p765_p8 = pnand %p764_p6, %p758_p2 }
 0x1c1   : > { %768 = shalt.err (!%p765_p8)
}
 0x1c2   : > { %s873_s29 = smov 64   ;;  %s874_s27 = smov 4   ;;  %v368_v19 = vpop.permute.xlu1 %367  ;;  %v366_v20 = vpop.permute.xlu0 %365 }
 0x1c3   : > { %598 = dma.vmem_to_hbm [thread:$0]  (%p997_p10), %s1075_s28, 256, %s1089_s12, %s375_s11, %s873_s29, %s873_s29, %s874_s27  }
 0x1c4   : > { %s1128_s21 = scalar_lea.hbm %s1188_s4, %s579_s13  ;;  %567 = vst.msk [vmem:[%s1079_s24 + $0xc] sm:$0xf] %vm345_vm2, %v368_v19  ;;  %566 = vst.msk [vmem:[%s1079_s24 + $0x8] sm:$0xf] %vm345_vm2, %v366_v20  ;;  %s380_s22 = scalar_lea.sflag [#allocation9], %s1053_s7 }
 0x1c5   : > { %s769_s6 = scalar_lea.vmem %s1091_s30, 256  ;;  %s875_s9 = smov [#allocation8]  }
 0x1c6   : > { %p770_p12 = scmp.ne.s32.totalorder %s1091_s30, %s769_s6  ;;  %s773_s28 = sshll.u32 %s875_s9, 4  ;;  %s774_s28 = int_to_ptr.vmem [resolvable:$false] %s773_s28 }
 0x1c7   : > { %s775_s18 = scalar_lea.vmem %s774_s28, 512  ;;  %p776_p5 = scmp.lt.s32.totalorder %s1091_s30, %s774_s28 }
 0x1c8   : > { %p771_p11 = pnand %p770_p12, %p997_p10  ;;  %p777_p9 = scmp.lt.s32.totalorder %s775_s18, %s769_s6 }
 0x1ca   : > { %p772_p0 = pneg %p771_p11  ;;  %p778_p1 = por %p777_p9, %p776_p5 }
 0x1cc   : > { %p779_p2 = pnand %p778_p1, %p772_p0 }
 0x1ce   : > { %782 = shalt.err (!%p779_p2)
}
 0x1cf   : > { %s783_s13 = scalar_lea.hbm %s1128_s21, 256  ;;  %s787_s11 = scalar_lea.hbm %s1188_s4, 512 }
 0x1d0   : > { %p784_p3 = scmp.ne.s32.totalorder %s1128_s21, %s783_s13  ;;  %p788_p4 = scmp.lt.u32.totalorder %s1128_s21, %s1188_s4 }
 0x1d1   : > { %p789_p6 = scmp.lt.u32.totalorder %s787_s11, %s783_s13  ;;  %p791_p12 = scmp.lt.u32.totalorder %s783_s13, %s1128_s21 }
 0x1d2   : > { %p785_p7 = pnand %p784_p3, %p997_p10 }
 0x1d3   : > { %p790_p8 = por %p789_p6, %p788_p4 }
 0x1d4   : > { %p786_p13 = pneg %p785_p7 }
 0x1d5   : > { %p792_p11 = por %p791_p12, %p790_p8 }
 0x1d7   : > { %p793_p0 = pnand %p792_p11, %p786_p13 }
 0x1d9   : > { %796 = shalt.err (!%p793_p0)
}
 0x1da   : > { %599 = dma.vmem_to_hbm [thread:$0]  (%p997_p10), %s1091_s30, 256, %s1128_s21, %s380_s22, %s873_s29, %s873_s29, %s874_s27  }
 0x1db PF: > { %s428_s23 = sand.u32 1, %s839_s15   ;;  %p1206_p5 = scmp.ne.s32.totalorder %s1196_s26, 0 }
 0x1dc   : > { %p1207_p9 = scmp.ge.s32.totalorder %s859_s20, 2  ;;  %s429_s6 = scalar_lea.sflag [#allocation4], %s428_s23 }
 0x1de   : > { %p611_p1 = pnand %p1207_p9, %p1206_p5 }
 0x1e0   : > { %830 = dma.done.wait (!%p611_p1), %s429_s6, 256  }
 0x1e1   : > { %832 = vsyncadd (!%p611_p1), %s429_s6, 4294967040  ;;  %s438_s8 = scalar_lea.sflag [#allocation9], %s428_s23 }
 0x1e2   : > { %834 = dma.done.wait (!%p611_p1), %s438_s8, 256  }
 0x1e3   : > { %836 = vsyncadd (!%p611_p1), %s438_s8, 4294967040  ;;  %s25_s20 = sadd.s32 1, %s859_s20   ;;  %s1208_s15 = smov %s843_s16 }
 0x1e4   : > { %p22_p2 = scmp.ge.s32.totalorder %s25_s20, 4   ;;  %s1209_s16 = smov %s847_s17 }
 0x1e5   : > { %s1210_s17 = smov %s1006_s10  ;;  %s1211_s18 = smov %s855_s19 }
 0x1e6   : > { %s1212_s19 = smov %s1214_s5  ;;  %24 = sbr.rel (!%p22_p2) target bundleno = 9 (0x9), region = 100 }
 0x1ed   :  { %443 = vsyncpa [#allocation3], 1 }
 0x1ee   :  { %445 = vsyncpa [#allocation3 + $0x1], 1 }
 0x1ef   :  { %446 = vsyncpa [#allocation6], 1 }
 0x1f0   :  { %447 = vsyncpa [#allocation4], 1 }
 0x1f1   :  { %449 = vsyncpa [#allocation4 + $0x1], 1 }
 0x1f2   :  { %450 = vsyncpa [#allocation9], 1 }
 0x1f3   :  { %452 = vsyncpa [#allocation9 + $0x1], 1 }

</bundles_post_ra>
